<compile_context>
chip_gen: v7x
topology: tpu7x:2x2x1
jax: 0.10.0
libtpu: 0.0.40
codegen_flags: <defaults>
</compile_context>

<pallas_src>
import jax
import jax.numpy as jnp
from jax.experimental import pallas as pl
from jax.experimental.pallas import tpu as pltpu


def _layernorm_kernel(x_ref, o_ref):
    # x_ref: (ROW_TILE, H) block in VMEM.  Widen in-register so the HBM->VMEM
    # DMA stays at the input dtype width on this memory-bound path.
    x = x_ref[...].astype(jnp.float32)
    n = x.shape[-1]

    # Single-pass statistics: one sweep builds sum(x) and sum(x*x); no full
    # tile `d` temporary is materialized before the final store.
    s = jnp.sum(x, axis=-1, keepdims=True)
    ss = jnp.sum(x * x, axis=-1, keepdims=True)
    mean = s * (1.0 / float(n))
    # Unbiased variance (divide by n - 1), matching torch.var's default.
    # ss - mean*s == ss - n*mean^2; clamp tiny negative cancellation to 0 so
    # degenerate rows give inf (like torch's 1/sqrt(0)) rather than NaN.
    var = jnp.maximum(ss - mean * s, 0.0) * (1.0 / float(n - 1))
    # rsqrt goes to the EUP slot (effectively free next to the loads/stores).
    scale = jax.lax.rsqrt(var)
    o_ref[...] = ((x - mean) * scale).astype(o_ref.dtype)


def _round_up(x, m):
    return ((x + m - 1) // m) * m


def _pick_tiling(rows, h, in_bytes, out_bytes):
    """Pick (row_tile, vmem_limit_bytes) for this chip."""
    try:
        vmem_cap = pltpu.get_tpu_info().vmem_capacity_bytes
    except Exception:
        vmem_cap = 64 << 20  # conservative (v7x-sized) fallback
    # Request only what the resident buffers need plus headroom:
    # 64 MiB on 128-MiB parts (v5e/v6e), 32 MiB on v7x.
    vmem_limit = min(int(vmem_cap // 2), 64 << 20)
    budget = int(vmem_limit * 0.8)

    # Per-row resident bytes: double-buffered input + double-buffered output
    # tiles, plus the in-kernel f32 temporaries (widened x and the normalized
    # result before the cast) at ~2 * 4 bytes/element.
    per_row = (2 * in_bytes + 2 * out_bytes + 2 * 4) * h
    row_tile = budget // per_row
    # 512-row tiles already sit at ~85% of HBM roofline; bigger only starves
    # the pipeline and eats VMEM.
    row_tile = max(8, min(512, (row_tile // 8) * 8))

    # Keep >= ~8 grid steps when the problem is big enough (>= ~4 blocks per
    # TensorCore on v7x megacore) so in-DMA / compute / out-DMA overlap;
    # never exceed the (sublane-rounded) row count.
    target = max(8, _round_up(pl.cdiv(rows, 8), 8))
    row_tile = min(row_tile, target, _round_up(rows, 8))
    return row_tile, vmem_limit


def layernorm_pallas(x):
    """x: (B, S, H); normalize over dim=2 exactly like the PyTorch module."""
    B, S, H = x.shape
    assert H > 1, "torch.var over dim=2 needs H >= 2 (divides by H - 1)"
    rows = B * S
    x2d = x.reshape(rows, H)

    row_tile, vmem_limit = _pick_tiling(rows, H, x.dtype.itemsize,
                                        x.dtype.itemsize)

    # Ragged last block (rows % row_tile != 0) is handled by Pallas: the
    # overhang rows read padded data and their writes are masked, so no
    # wrapper-side pad/slice copies are needed.
    out = pl.pallas_call(
        _layernorm_kernel,
        out_shape=jax.ShapeDtypeStruct((rows, H), x.dtype),
        grid_spec=pltpu.PrefetchScalarGridSpec(
            num_scalar_prefetch=0,
            grid=(pl.cdiv(rows, row_tile),),
            in_specs=[pl.BlockSpec((row_tile, H), lambda i: (i, 0))],
            out_specs=pl.BlockSpec((row_tile, H), lambda i: (i, 0)),
        ),
        compiler_params=pltpu.CompilerParams(
            dimension_semantics=("parallel",),
            vmem_limit_bytes=vmem_limit,
        ),
    )(x2d)

    return out.reshape(B, S, H)


if __name__ == "__main__":
    key = jax.random.PRNGKey(0)
    B, S, H = 2, 8, 32
    x = jax.random.normal(key, (B, S, H), dtype=jnp.float32)

    y = layernorm_pallas(x)
    jax.block_until_ready(y)

    # Reference (pure JAX, same semantics as the PyTorch module).
    mean = jnp.mean(x, axis=2, keepdims=True)
    var = jnp.var(x, axis=2, keepdims=True, ddof=1)  # unbiased, like torch.var
    y_ref = (x - mean) / jnp.sqrt(var)
    assert jnp.allclose(y, y_ref, atol=1e-5, rtol=1e-5), "mismatch vs reference"

    print("KERNEL_OK")
</pallas_src>

<mosaic_0001>
module attributes {stable_mosaic.version = 11 : i64} {
  func.func @_layernorm_kernel(%arg0: i32, %arg1: memref<8x32xf32, #tpu.memory_space<vmem>>, %arg2: memref<8x32xf32, #tpu.memory_space<vmem>>) attributes {dimension_semantics = [#tpu.dimension_semantics<parallel>], iteration_bounds = array<i64: 2>, scalar_prefetch = 0 : i64, scratch_operands = 0 : i64, tpu.core_type = #tpu.core_type<tc>, window_params = [{transform_indices = @transform_0, window_bounds = array<i64: 8, 32>}, {transform_indices = @transform_1, window_bounds = array<i64: 8, 32>}]} {
    %c0 = arith.constant 0 : index
    %c0_0 = arith.constant 0 : index
    %0 = vector.load %arg1[%c0, %c0_0] : memref<8x32xf32, #tpu.memory_space<vmem>>, vector<8x32xf32>
    %cst = arith.constant dense<0.000000e+00> : vector<8xf32>
    %1 = vector.multi_reduction <add>, %0, %cst [1] : vector<8x32xf32> to vector<8xf32>
    %2 = vector.shape_cast %1 : vector<8xf32> to vector<8x1xf32>
    %3 = arith.mulf %0, %0 : vector<8x32xf32>
    %cst_1 = arith.constant dense<0.000000e+00> : vector<8xf32>
    %4 = vector.multi_reduction <add>, %3, %cst_1 [1] : vector<8x32xf32> to vector<8xf32>
    %5 = vector.shape_cast %4 : vector<8xf32> to vector<8x1xf32>
    %cst_2 = arith.constant 3.125000e-02 : f32
    %6 = vector.broadcast %cst_2 : f32 to vector<8x1xf32>
    %7 = arith.mulf %2, %6 : vector<8x1xf32>
    %8 = arith.mulf %7, %2 : vector<8x1xf32>
    %9 = arith.subf %5, %8 : vector<8x1xf32>
    %cst_3 = arith.constant 0.000000e+00 : f32
    %10 = vector.broadcast %cst_3 : f32 to vector<8x1xf32>
    %11 = arith.maximumf %9, %10 : vector<8x1xf32>
    %cst_4 = arith.constant 0.0322580636 : f32
    %12 = vector.broadcast %cst_4 : f32 to vector<8x1xf32>
    %13 = arith.mulf %11, %12 : vector<8x1xf32>
    %14 = math.rsqrt %13 : vector<8x1xf32>
    %15 = vector.broadcast %7 : vector<8x1xf32> to vector<8x32xf32>
    %16 = arith.subf %0, %15 : vector<8x32xf32>
    %17 = vector.broadcast %14 : vector<8x1xf32> to vector<8x32xf32>
    %18 = arith.mulf %16, %17 : vector<8x32xf32>
    %c0_5 = arith.constant 0 : index
    %c0_6 = arith.constant 0 : index
    %19 = vector.load %arg2[%c0_5, %c0_6] : memref<8x32xf32, #tpu.memory_space<vmem>>, vector<8x32xf32>
    tpu.vector_store %arg2[%c0_5, %c0_6], %18 {strides = array<i32>} : memref<8x32xf32, #tpu.memory_space<vmem>>, vector<8x32xf32>,
    return
  }
  func.func @transform_0(%arg0: i32) -> (i32, i32) {
    %c0_i32 = arith.constant 0 : i32
    %c0_i32_0 = arith.constant 0 : i32
    return %arg0, %c0_i32 : i32, i32
  }
  func.func @transform_1(%arg0: i32) -> (i32, i32) {
    %c0_i32 = arith.constant 0 : i32
    %c0_i32_0 = arith.constant 0 : i32
    return %arg0, %c0_i32 : i32, i32
  }
}

</mosaic_0001>

<bundles_post_ra>
// kernel: tpu_custom_call.1
= control target key start
LH: loop header
LB: loop body
LE: loop exit
PB: predicated region body
PF: predicated region fallthrough
CT: control target
= control target key end

     0   :  { %6 = vsyncpa [#allocation3], 0  ;;  %s568_s0 = inlined_call_operand.hbm [shape: f32[16,32], index: 0, kind: input, shape index: {}]   ;;  %s569_s1 = inlined_call_operand.hbm [shape: f32[16,32], index: 1, kind: output, shape index: {}]  }
   0x1   :  { %8 = vsyncpa [#allocation3 + $0x1], 0 }
   0x2   :  { %9 = vsyncpa [#allocation4], 0 }
   0x3   :  { %11 = vsyncpa [#allocation4 + $0x1], 0  ;;  %s404_s6 = smov 0   ;;  %s406_s7 = smov 0  }
   0x4   :  { %s408_s8 = smov 0   ;;  %s410_s9 = smov 0  }
   0x5 LB: > { %s425_s10 = sadd.s32 4294967295, %s390_s9   ;;  %s234_s11 = sadd.s32 4294967294, %s390_s9   ;;  %s390_s9 = sphi %s410_s9, %s584_s9   ;;  %s386_s8 = sphi %s408_s8, %s583_s8   ;;  %s382_s7 = sphi %s406_s7, %s582_s7   ;;  %s378_s6 = sphi %s404_s6, %s581_s6  }
   0x6   : > { %s429_s12 = sadd.s32 1, %s390_s9   ;;  %s24_s13 = sadd.s32 1, %s386_s8 }
   0x7   : > { %s21_s14 = ssub.s32 %s390_s9, %s429_s12  ;;  %p31_p0 = scmp.ne.s32.totalorder %s386_s8, %s382_s7 }
   0x8   : > { %p22_p1 = scmp.eq.s32.totalorder %s21_s14, 0  ;;  %p32_p2 = scmp.eq.s32.totalorder %s390_s9, 0 }
   0x9   : > { %p37_p3 = scmp.ne.s32.totalorder %s382_s7, %s378_s6  ;;  %p38_p4 = scmp.eq.s32.totalorder %s425_s10, 0 }
   0xa   : > { %s441_s15 = scalar_select %p22_p1, %s386_s8, %s24_s13  }
   0xb   : > { %p443_p5 = por %p32_p2, %p31_p0  ;;  %p447_p6 = por %p38_p4, %p37_p3 }
   0xc   : > { %p61_p7 = scmp.eq.s32.totalorder %s425_s10, 1  ;;  %p67_p8 = scmp.eq.s32.totalorder %s234_s11, 1 }
   0xd   : > { %p258_p10 = scmp.lt.s32.totalorder %s390_s9, 2  ;;  %s87_s20 = sand.u32 1, %s386_s8  }
   0xe   : > { %p454_p11 = por %p61_p7, %p31_p0  ;;  %p458_p12 = por %p67_p8, %p37_p3 }
   0xf   : > { %s238_s21 = sshll.u32 %s390_s9, 7  ;;  %s237_s22 = sshll.u32 %s87_s20, 3 }
  0x10   : > { %s573_s18 = scalar_select %p454_p11, 1, 0 }
  0x11   : > { %s574_s19 = scalar_select %p458_p12, 1, 0 }
  0x12   : > { %s467_s25 = scalar_lea.hbm %s568_s0, %s238_s21  ;;  %s91_s26 = scalar_lea.vmem [#allocation2], %s237_s22 }
  0x13   : > { %s98_s27 = sshll.u32 %s91_s26, 4  ;;  %p471_p13 = pnand %p258_p10, %p443_p5  ;;  %s475_s27 = int_to_ptr.vmem [resolvable:$true] %s98_s27 }
  0x14   : > { %s88_s29 = scalar_lea.sflag [#allocation3], %s87_s20  ;;  %s294_s30 = scalar_lea.hbm %s467_s25, 128 }
  0x15   : > { %p295_p2 = scmp.ne.s32.totalorder %s467_s25, %s294_s30  ;;  %p296_p3 = pneg %p471_p13 }
  0x16   : > { %s299_s4 = scalar_lea.hbm %s568_s0, 256  ;;  %p300_p5 = scmp.lt.u32.totalorder %s467_s25, %s568_s0 }
  0x17   : > { %p297_p4 = pnand %p296_p3, %p295_p2  ;;  %p301_p8 = scmp.lt.u32.totalorder %s299_s4, %s294_s30 }
  0x18   : > { %p303_p9 = scmp.lt.u32.totalorder %s294_s30, %s467_s25 }
  0x19   : > { %p298_p7 = pneg %p297_p4  ;;  %p302_p10 = por %p301_p8, %p300_p5 }
  0x1b   : > { %p304_p0 = por %p303_p9, %p302_p10 }
  0x1d   : > { %p305_p1 = pnand %p304_p0, %p298_p7 }
  0x1f   : > { %308 = shalt.err (!%p305_p1)
}
  0x20   : > { %s309_s13 = scalar_lea.vmem %s475_s27, 128  ;;  %s392_s14 = smov [#allocation2]  }
  0x21   : > { %p310_p2 = scmp.ne.s32.totalorder %s475_s27, %s309_s13  ;;  %s314_s16 = sshll.u32 %s392_s14, 4  ;;  %s315_s16 = int_to_ptr.vmem [resolvable:$false] %s314_s16 }
  0x22   : > { %s316_s20 = scalar_lea.vmem %s315_s16, 256  ;;  %p317_p11 = scmp.lt.s32.totalorder %s475_s27, %s315_s16 }
  0x23   : > { %p312_p4 = pnand %p310_p2, %p296_p3  ;;  %p318_p5 = scmp.lt.s32.totalorder %s316_s20, %s309_s13 }
  0x25   : > { %p313_p12 = pneg %p312_p4  ;;  %p319_p8 = por %p318_p5, %p317_p11 }
  0x27   : > { %p320_p9 = pnand %p319_p8, %p313_p12 }
  0x29   : > { %323 = shalt.err (!%p320_p9)
}
  0x2a   : > { %253 = dma.hbm_to_vmem [thread:$0]  (!%p471_p13), %s467_s25, 128, %s475_s27, %s88_s29  }
  0x2b   : > { %p576_p0 = scmp.lt.s32.totalorder %s390_s9, 3  ;;  %p577_p1 = scmp.ge.s32.totalorder %s390_s9, 1 }
  0x2d   : > { %p104_p3 = pnand %p577_p1, %p576_p0 }
  0x2e   : > { %s509_s21 = sand.u32 (!%p104_p3), 1, %s382_s7  }
  0x2f   : > { %107 = sbr.rel (%p104_p3) target bundleno = 236 (0xec), region = 24  ;;  %s240_s22 = sshll.u32 (!%p104_p3), %s509_s21, 3 }
  0x30   : > { %s110_s23 = scalar_lea.sflag (!%p104_p3), [#allocation3], %s509_s21  ;;  %s113_s24 = scalar_lea.vmem (!%p104_p3), [#allocation2], %s240_s22 }
  0x36   : > { %369 = dma.done.wait (%p447_p6), %s110_s23, 128  }
  0x37   : > { %371 = vsyncadd (%p447_p6), %s110_s23, 4294967168  ;;  %vm133_vm0 = vcmask 261120   ;;  %v132_v0 = vld [vmem:[%s113_s24] sm:$0xff]  ;;  %s243_s17 = sshll.u32 %s425_s10, 7  ;;  %s131_s25 = scalar_lea.vmem [#allocation5], %s240_s22 }
  0x38   : > { %v134_v1 = vsel %vm133_vm0, %v132_v0, 0.0  ;;  %v137_v2 = vmul.f32 %v132_v0, %v132_v0  ;;  %s164_s26 = sshll.u32 %s131_s25, 4  ;;  %s523_s29 = scalar_lea.hbm %s569_s1, %s243_s17  ;;  %s525_s26 = int_to_ptr.vmem [resolvable:$true] %s164_s26 }
  0x39   : > { %135 = vadd.xlane.f32.xlu0 %v134_v1  ;;  %s151_s30 = scalar_lea.sflag [#allocation4], %s509_s21  ;;  %s324_s2 = scalar_lea.vmem %s525_s26, 128 }
  0x3a   : > { %v138_v3 = vsel %vm133_vm0, %v137_v2, 0.0  ;;  %p325_p6 = scmp.ne.s32.totalorder %s525_s26, %s324_s2  ;;  %p578_p11 = scmp.ne.s32.totalorder %s573_s18, 0 }
  0x3b   : > { %s393_s10 = smov [#allocation5]  }
  0x3c   : > { %p326_p12 = pnand %p325_p6, %p578_p11  ;;  %s328_s3 = sshll.u32 %s393_s10, 4  ;;  %s329_s3 = int_to_ptr.vmem [resolvable:$false] %s328_s3 }
  0x3d   : > { %139 = vadd.xlane.f32.xlu0 %v138_v3  ;;  %s330_s4 = scalar_lea.vmem %s329_s3, 256  ;;  %p331_p7 = scmp.lt.s32.totalorder %s525_s26, %s329_s3 }
  0x3e   : > { %p327_p13 = pneg %p326_p12  ;;  %p332_p10 = scmp.lt.s32.totalorder %s330_s4, %s324_s2 }
  0x40   : > { %p333_p2 = por %p332_p10, %p331_p7 }
  0x42   : > { %p334_p4 = pnand %p333_p2, %p327_p13 }
  0xc6   : > { %v136_v4 = vpop.xlane.xlu0 %135 }
  0xc7   : > { %v141_v5 = vmul.f32 0.03125, %v136_v4 }
  0xc9   : > { %v142_v6 = vmul.f32 %v141_v5, %v136_v4  ;;  %v147_v11 = vsub.f32 %v132_v0, %v141_v5 }
  0xca   : > { %v140_v7 = vpop.xlane.xlu0 %139 }
  0xcb   : > { %v143_v8 = vsub.f32 %v140_v7, %v142_v6 }
  0xcd   : > { %v144_v9 = vmax.f32 %v143_v8, 0.0 }
  0xcf   : > { %v145_v10 = vmul.f32 0.032258064, %v144_v9 }
  0xd1   : > { %292 = vrsqrt.f32 %v145_v10 }
  0xdb   : > { %v293_v12 = vpop.eup %292 }
  0xdc   : > { %v148_v13 = vmul.f32 %v293_v12, %v147_v11 }
  0xde   : > { %149 = vst.msk [vmem:[%s131_s25] sm:$0xff] %vm133_vm0, %v148_v13 }
  0xdf   : > { %337 = shalt.err (!%p334_p4)
}
  0xe0   : > { %s338_s5 = scalar_lea.hbm %s523_s29, 128  ;;  %s342_s14 = scalar_lea.hbm %s569_s1, 256 }
  0xe1   : > { %p339_p5 = scmp.ne.s32.totalorder %s523_s29, %s338_s5  ;;  %p343_p0 = scmp.lt.u32.totalorder %s523_s29, %s569_s1 }
  0xe2   : > { %p344_p1 = scmp.lt.u32.totalorder %s342_s14, %s338_s5  ;;  %p346_p6 = scmp.lt.u32.totalorder %s338_s5, %s523_s29 }
  0xe3   : > { %p340_p8 = pnand %p339_p5, %p578_p11 }
  0xe4   : > { %p345_p3 = por %p344_p1, %p343_p0 }
  0xe5   : > { %p341_p9 = pneg %p340_p8 }
  0xe6   : > { %p347_p12 = por %p346_p6, %p345_p3 }
  0xe8   : > { %p348_p13 = pnand %p347_p12, %p341_p9 }
  0xea   : > { %351 = shalt.err (!%p348_p13)
}
  0xeb   : > { %248 = dma.vmem_to_hbm [thread:$0]  (%p578_p11), %s525_s26, 128, %s523_s29, %s151_s30  }
  0xec PF: > { %s176_s21 = sand.u32 1, %s378_s6   ;;  %p579_p7 = scmp.ne.s32.totalorder %s574_s19, 0 }
  0xed   : > { %p580_p10 = scmp.ge.s32.totalorder %s390_s9, 2  ;;  %s177_s22 = scalar_lea.sflag [#allocation4], %s176_s21 }
  0xef   : > { %p255_p2 = pnand %p580_p10, %p579_p7 }
  0xf1   : > { %373 = dma.done.wait (!%p255_p2), %s177_s22, 128  }
  0xf2   : > { %375 = vsyncadd (!%p255_p2), %s177_s22, 4294967168  ;;  %p14_p4 = scmp.ge.s32.totalorder %s429_s12, 4   ;;  %s581_s6 = smov %s382_s7 }
  0xf3   : > { %s582_s7 = smov %s386_s8  ;;  %s583_s8 = smov %s441_s15 }
  0xf4   : > { %s584_s9 = smov %s429_s12  ;;  %16 = sbr.rel (!%p14_p4) target bundleno = 5 (0x5), region = 69 }
  0xfb   :  { %182 = vsyncpa [#allocation3], 1 }
  0xfc   :  { %184 = vsyncpa [#allocation3 + $0x1], 1 }
  0xfd   :  { %185 = vsyncpa [#allocation4], 1 }
  0xfe   :  { %187 = vsyncpa [#allocation4 + $0x1], 1 }

</bundles_post_ra>
